<compile_context>
chip_gen: v7x
topology: tpu7x:2x2x1
jax: 0.10.0
libtpu: 0.0.40
codegen_flags: <defaults>
</compile_context>

<pallas_src>
import jax
import jax.numpy as jnp
import numpy as np
from jax.experimental import pallas as pl
from jax.experimental.pallas import tpu as pltpu

_LANE = 128             # TPU vreg lane width: last block dim multiple of 128
_MAX_BLOCK_ROWS = 2048  # 2048 x 128 f32 = 1 MiB/operand block; 4 streams x 2 bufs = 8 MiB VMEM
_SQRT_HALF = 0.7071067811865476


# ---------------------------------------------------------------------------
# In-kernel exact GELU (erf via polynomial; only Mosaic-lowerable ops)
# ---------------------------------------------------------------------------
def _erf_f32(x):
    # Abramowitz & Stegun 7.1.26, max abs error ~1.5e-7.
    p = 0.3275911
    a1, a2, a3, a4, a5 = (0.254829592, -0.284496736, 1.421413741,
                          -1.453152027, 1.061405429)
    ax = jnp.abs(x)
    # Exact divide on purpose: approx reciprocal would cost ~1e-4 erf error.
    t = 1.0 / (1.0 + p * ax)
    poly = ((((a5 * t + a4) * t + a3) * t + a2) * t + a1) * t
    y = 1.0 - poly * jnp.exp(-ax * ax)          # exp goes to the EUP slot
    return jnp.where(x < 0.0, -y, y)


def _gelu_exact_f32(x):
    # PyTorch F.gelu default: 0.5 * x * (1 + erf(x / sqrt(2)))
    return 0.5 * x * (1.0 + _erf_f32(x * _SQRT_HALF))


# ---------------------------------------------------------------------------
# Pallas kernel: fused GELU over the real plane and the imaginary plane
# ---------------------------------------------------------------------------
def _cgelu_kernel(re_ref, im_ref, ore_ref, oim_ref):
    # blocks: (BR, 128) f32 -> full-width loads / VPU math / stores
    ore_ref[...] = _gelu_exact_f32(re_ref[...])
    oim_ref[...] = _gelu_exact_f32(im_ref[...])


# ---------------------------------------------------------------------------
# Wrapper: lane-dense layout plumbing + single pallas_call
# ---------------------------------------------------------------------------
def complex_gelu(x):
    """x: complex64 array (any shape) -> GELU(real) + i * GELU(imag), complex64."""
    shape = x.shape
    n = int(np.prod(shape)) if len(shape) else 1
    if n == 0:
        return x.astype(jnp.complex64)

    re = jnp.real(x).astype(jnp.float32)
    im = jnp.imag(x).astype(jnp.float32)

    # lane-dense 2D layout: (rows, 128); pad flat length to a multiple of 128
    # ONLY if needed (small jnp.pad), no row padding -- ragged last block instead.
    pad = (-n) % _LANE
    rows = (n + pad) // _LANE

    def to2d(v):
        flat = v.reshape(-1)
        if pad:
            flat = jnp.pad(flat, (0, pad))
        return flat.reshape(rows, _LANE)

    re2d, im2d = to2d(re), to2d(im)

    # Either the full row extent (allowed even if not %8) or a multiple-of-8 tile.
    block_rows = rows if rows <= _MAX_BLOCK_ROWS else _MAX_BLOCK_ROWS
    grid = (pl.cdiv(rows, block_rows),)   # ragged last block handled by Pallas

    spec = pl.BlockSpec((block_rows, _LANE), lambda i: (i, 0))
    out_re2d, out_im2d = pl.pallas_call(
        _cgelu_kernel,
        out_shape=(jax.ShapeDtypeStruct((rows, _LANE), jnp.float32),
                   jax.ShapeDtypeStruct((rows, _LANE), jnp.float32)),
        grid=grid,
        in_specs=[spec, spec],
        out_specs=(spec, spec),
        compiler_params=pltpu.CompilerParams(dimension_semantics=("parallel",)),
    )(re2d, im2d)

    if pad:
        out_re = out_re2d.reshape(-1)[:n].reshape(shape)
        out_im = out_im2d.reshape(-1)[:n].reshape(shape)
    else:
        out_re = out_re2d.reshape(shape)
        out_im = out_im2d.reshape(shape)
    return jax.lax.complex(out_re, out_im)


complex_gelu_jit = jax.jit(complex_gelu)


# ---------------------------------------------------------------------------
if __name__ == "__main__":
    key = jax.random.PRNGKey(0)
    k_re, k_im = jax.random.split(key)

    # small complex spectral-activation-like tensor: (N, C, D, H, W)
    shape = (2, 4, 8, 8, 8)                      # numel = 4096 (multiple of 128)
    xr = jax.random.normal(k_re, shape, jnp.float32)
    xi = jax.random.normal(k_im, shape, jnp.float32)
    x = jax.lax.complex(xr, xi)                  # complex64

    out = jax.block_until_ready(complex_gelu_jit(x))
    assert out.shape == shape and out.dtype == jnp.complex64, (out.shape, out.dtype)

    ref = jax.lax.complex(jax.nn.gelu(xr, approximate=False),
                          jax.nn.gelu(xi, approximate=False))
    np.testing.assert_allclose(np.asarray(out), np.asarray(ref), atol=1e-5, rtol=1e-5)

    # ragged path: numel not a multiple of 128 exercises the pad + masked tail
    shape2 = (3, 5, 7)
    yr = jax.random.normal(k_re, shape2, jnp.float32)
    yi = jax.random.normal(k_im, shape2, jnp.float32)
    y = jax.lax.complex(yr, yi)
    out2 = jax.block_until_ready(complex_gelu_jit(y))
    ref2 = jax.lax.complex(jax.nn.gelu(yr, approximate=False),
                           jax.nn.gelu(yi, approximate=False))
    np.testing.assert_allclose(np.asarray(out2), np.asarray(ref2), atol=1e-5, rtol=1e-5)

    print("KERNEL_OK")
</pallas_src>

<mosaic_0001>
module attributes {stable_mosaic.version = 11 : i64} {
  func.func @_cgelu_kernel(%arg0: i32, %arg1: memref<32x128xf32, #tpu.memory_space<vmem>>, %arg2: memref<32x128xf32, #tpu.memory_space<vmem>>, %arg3: memref<32x128xf32, #tpu.memory_space<vmem>>, %arg4: memref<32x128xf32, #tpu.memory_space<vmem>>) attributes {dimension_semantics = [#tpu.dimension_semantics<parallel>], iteration_bounds = array<i64: 1>, scalar_prefetch = 0 : i64, scratch_operands = 0 : i64, tpu.core_type = #tpu.core_type<tc>, window_params = [{transform_indices = @transform_0, window_bounds = array<i64: 32, 128>}, {transform_indices = @transform_1, window_bounds = array<i64: 32, 128>}, {transform_indices = @transform_2, window_bounds = array<i64: 32, 128>}, {transform_indices = @transform_3, window_bounds = array<i64: 32, 128>}]} {
    %c0 = arith.constant 0 : index
    %c0_0 = arith.constant 0 : index
    %0 = vector.load %arg1[%c0, %c0_0] : memref<32x128xf32, #tpu.memory_space<vmem>>, vector<32x128xf32>
    %cst = arith.constant 5.000000e-01 : f32
    %1 = vector.broadcast %cst : f32 to vector<32x128xf32>
    %2 = arith.mulf %1, %0 : vector<32x128xf32>
    %cst_1 = arith.constant 0.707106769 : f32
    %3 = vector.broadcast %cst_1 : f32 to vector<32x128xf32>
    %4 = arith.mulf %0, %3 : vector<32x128xf32>
    %5 = math.absf %4 : vector<32x128xf32>
    %cst_2 = arith.constant 0.327591091 : f32
    %6 = vector.broadcast %cst_2 : f32 to vector<32x128xf32>
    %7 = arith.mulf %6, %5 : vector<32x128xf32>
    %cst_3 = arith.constant 1.000000e+00 : f32
    %8 = vector.broadcast %cst_3 : f32 to vector<32x128xf32>
    %9 = arith.addf %8, %7 : vector<32x128xf32>
    %cst_4 = arith.constant 1.000000e+00 : f32
    %10 = vector.broadcast %cst_4 : f32 to vector<32x128xf32>
    %11 = arith.divf %10, %9 : vector<32x128xf32>
    %cst_5 = arith.constant 1.06140542 : f32
    %12 = vector.broadcast %cst_5 : f32 to vector<32x128xf32>
    %13 = arith.mulf %12, %11 : vector<32x128xf32>
    %cst_6 = arith.constant -1.45315206 : f32
    %14 = vector.broadcast %cst_6 : f32 to vector<32x128xf32>
    %15 = arith.addf %13, %14 : vector<32x128xf32>
    %16 = arith.mulf %15, %11 : vector<32x128xf32>
    %cst_7 = arith.constant 1.42141378 : f32
    %17 = vector.broadcast %cst_7 : f32 to vector<32x128xf32>
    %18 = arith.addf %16, %17 : vector<32x128xf32>
    %19 = arith.mulf %18, %11 : vector<32x128xf32>
    %cst_8 = arith.constant -0.284496725 : f32
    %20 = vector.broadcast %cst_8 : f32 to vector<32x128xf32>
    %21 = arith.addf %19, %20 : vector<32x128xf32>
    %22 = arith.mulf %21, %11 : vector<32x128xf32>
    %cst_9 = arith.constant 0.254829586 : f32
    %23 = vector.broadcast %cst_9 : f32 to vector<32x128xf32>
    %24 = arith.addf %22, %23 : vector<32x128xf32>
    %25 = arith.mulf %24, %11 : vector<32x128xf32>
    %cst_10 = arith.constant 0.000000e+00 : f32
    %26 = vector.broadcast %cst_10 : f32 to vector<32x128xf32>
    %27 = arith.subf %26, %5 : vector<32x128xf32>
    %28 = arith.mulf %27, %5 : vector<32x128xf32>
    %29 = math.exp %28 : vector<32x128xf32>
    %30 = arith.mulf %25, %29 : vector<32x128xf32>
    %cst_11 = arith.constant 1.000000e+00 : f32
    %31 = vector.broadcast %cst_11 : f32 to vector<32x128xf32>
    %32 = arith.subf %31, %30 : vector<32x128xf32>
    %cst_12 = arith.constant 0.000000e+00 : f32
    %33 = vector.broadcast %cst_12 : f32 to vector<32x128xf32>
    %34 = arith.cmpf olt, %4, %33 : vector<32x128xf32>
    %cst_13 = arith.constant 0.000000e+00 : f32
    %35 = vector.broadcast %cst_13 : f32 to vector<32x128xf32>
    %36 = arith.subf %35, %32 : vector<32x128xf32>
    %37 = arith.select %34, %36, %32 : vector<32x128xi1>, vector<32x128xf32>
    %cst_14 = arith.constant 1.000000e+00 : f32
    %38 = vector.broadcast %cst_14 : f32 to vector<32x128xf32>
    %39 = arith.addf %38, %37 : vector<32x128xf32>
    %40 = arith.mulf %2, %39 : vector<32x128xf32>
    %c0_15 = arith.constant 0 : index
    %c0_16 = arith.constant 0 : index
    %41 = vector.load %arg3[%c0_15, %c0_16] : memref<32x128xf32, #tpu.memory_space<vmem>>, vector<32x128xf32>
    tpu.vector_store %arg3[%c0_15, %c0_16], %40 {strides = array<i32>} : memref<32x128xf32, #tpu.memory_space<vmem>>, vector<32x128xf32>,
    %c0_17 = arith.constant 0 : index
    %c0_18 = arith.constant 0 : index
    %42 = vector.load %arg2[%c0_17, %c0_18] : memref<32x128xf32, #tpu.memory_space<vmem>>, vector<32x128xf32>
    %cst_19 = arith.constant 5.000000e-01 : f32
    %43 = vector.broadcast %cst_19 : f32 to vector<32x128xf32>
    %44 = arith.mulf %43, %42 : vector<32x128xf32>
    %cst_20 = arith.constant 0.707106769 : f32
    %45 = vector.broadcast %cst_20 : f32 to vector<32x128xf32>
    %46 = arith.mulf %42, %45 : vector<32x128xf32>
    %47 = math.absf %46 : vector<32x128xf32>
    %cst_21 = arith.constant 0.327591091 : f32
    %48 = vector.broadcast %cst_21 : f32 to vector<32x128xf32>
    %49 = arith.mulf %48, %47 : vector<32x128xf32>
    %cst_22 = arith.constant 1.000000e+00 : f32
    %50 = vector.broadcast %cst_22 : f32 to vector<32x128xf32>
    %51 = arith.addf %50, %49 : vector<32x128xf32>
    %cst_23 = arith.constant 1.000000e+00 : f32
    %52 = vector.broadcast %cst_23 : f32 to vector<32x128xf32>
    %53 = arith.divf %52, %51 : vector<32x128xf32>
    %cst_24 = arith.constant 1.06140542 : f32
    %54 = vector.broadcast %cst_24 : f32 to vector<32x128xf32>
    %55 = arith.mulf %54, %53 : vector<32x128xf32>
    %cst_25 = arith.constant -1.45315206 : f32
    %56 = vector.broadcast %cst_25 : f32 to vector<32x128xf32>
    %57 = arith.addf %55, %56 : vector<32x128xf32>
    %58 = arith.mulf %57, %53 : vector<32x128xf32>
    %cst_26 = arith.constant 1.42141378 : f32
    %59 = vector.broadcast %cst_26 : f32 to vector<32x128xf32>
    %60 = arith.addf %58, %59 : vector<32x128xf32>
    %61 = arith.mulf %60, %53 : vector<32x128xf32>
    %cst_27 = arith.constant -0.284496725 : f32
    %62 = vector.broadcast %cst_27 : f32 to vector<32x128xf32>
    %63 = arith.addf %61, %62 : vector<32x128xf32>
    %64 = arith.mulf %63, %53 : vector<32x128xf32>
    %cst_28 = arith.constant 0.254829586 : f32
    %65 = vector.broadcast %cst_28 : f32 to vector<32x128xf32>
    %66 = arith.addf %64, %65 : vector<32x128xf32>
    %67 = arith.mulf %66, %53 : vector<32x128xf32>
    %cst_29 = arith.constant 0.000000e+00 : f32
    %68 = vector.broadcast %cst_29 : f32 to vector<32x128xf32>
    %69 = arith.subf %68, %47 : vector<32x128xf32>
    %70 = arith.mulf %69, %47 : vector<32x128xf32>
    %71 = math.exp %70 : vector<32x128xf32>
    %72 = arith.mulf %67, %71 : vector<32x128xf32>
    %cst_30 = arith.constant 1.000000e+00 : f32
    %73 = vector.broadcast %cst_30 : f32 to vector<32x128xf32>
    %74 = arith.subf %73, %72 : vector<32x128xf32>
    %cst_31 = arith.constant 0.000000e+00 : f32
    %75 = vector.broadcast %cst_31 : f32 to vector<32x128xf32>
    %76 = arith.cmpf olt, %46, %75 : vector<32x128xf32>
    %cst_32 = arith.constant 0.000000e+00 : f32
    %77 = vector.broadcast %cst_32 : f32 to vector<32x128xf32>
    %78 = arith.subf %77, %74 : vector<32x128xf32>
    %79 = arith.select %76, %78, %74 : vector<32x128xi1>, vector<32x128xf32>
    %cst_33 = arith.constant 1.000000e+00 : f32
    %80 = vector.broadcast %cst_33 : f32 to vector<32x128xf32>
    %81 = arith.addf %80, %79 : vector<32x128xf32>
    %82 = arith.mulf %44, %81 : vector<32x128xf32>
    %c0_34 = arith.constant 0 : index
    %c0_35 = arith.constant 0 : index
    %83 = vector.load %arg4[%c0_34, %c0_35] : memref<32x128xf32, #tpu.memory_space<vmem>>, vector<32x128xf32>
    tpu.vector_store %arg4[%c0_34, %c0_35], %82 {strides = array<i32>} : memref<32x128xf32, #tpu.memory_space<vmem>>, vector<32x128xf32>,
    return
  }
  func.func @transform_0(%arg0: i32) -> (i32, i32) {
    %c0_i32 = arith.constant 0 : i32
    %c0_i32_0 = arith.constant 0 : i32
    return %arg0, %c0_i32 : i32, i32
  }
  func.func @transform_1(%arg0: i32) -> (i32, i32) {
    %c0_i32 = arith.constant 0 : i32
    %c0_i32_0 = arith.constant 0 : i32
    return %arg0, %c0_i32 : i32, i32
  }
  func.func @transform_2(%arg0: i32) -> (i32, i32) {
    %c0_i32 = arith.constant 0 : i32
    %c0_i32_0 = arith.constant 0 : i32
    return %arg0, %c0_i32 : i32, i32
  }
  func.func @transform_3(%arg0: i32) -> (i32, i32) {
    %c0_i32 = arith.constant 0 : i32
    %c0_i32_0 = arith.constant 0 : i32
    return %arg0, %c0_i32 : i32, i32
  }
}

</mosaic_0001>

<bundles_post_ra>
// kernel: custom-call.1
= control target key start
LH: loop header
LB: loop body
LE: loop exit
PB: predicated region body
PF: predicated region fallthrough
CT: control target
= control target key end

     0   :  { %s59_s0 = inlined_call_operand.hbm [shape: c64[2,4,8,8,8], index: 0, kind: input, shape index: {}]   ;;  %s60_s1 = inlined_call_operand.vmem [shape: f32[2,4,8,8,8], index: 1, kind: output, shape index: {}]  }
   0x1   :  { %s2_s8 = scalar_lea.hbm %s59_s0, 8192 }
   0x2   :  { %3 = vsyncpa [#allocation0], 0  ;;  %s4_s11 = sshll.u32 %s60_s1, 4  ;;  %s34_s14 = scalar_lea.hbm %s59_s0, 16384  ;;  %s5_s11 = int_to_ptr.vmem [resolvable:$true] %s4_s11 }
   0x3   :  { %p11_p0 = scmp.ne.s32.totalorder %s2_s8, %s34_s14  ;;  %p13_p1 = scmp.lt.u32.totalorder %s2_s8, %s59_s0 }
   0x4   :  { %p14_p2 = scmp.lt.u32.totalorder %s34_s14, %s34_s14  ;;  %p16_p4 = scmp.lt.u32.totalorder %s34_s14, %s2_s8 }
   0x6   :  { %p15_p3 = por %p14_p2, %p13_p1 }
   0x8   :  { %p17_p5 = por %p16_p4, %p15_p3 }
   0xa   :  { %p18_p6 = pnand %p17_p5, %p11_p0 }
   0xc   :  { %21 = shalt.err (!%p18_p6)  }
   0xd   :  { %s22_s17 = scalar_lea.vmem %s5_s11, 8192  ;;  %p27_p8 = scmp.lt.s32.totalorder %s5_s11, %s5_s11 }
   0xe   :  { %p23_p7 = scmp.ne.s32.totalorder %s5_s11, %s22_s17  ;;  %p28_p9 = scmp.lt.s32.totalorder %s22_s17, %s22_s17 }
  0x10   :  { %p29_p10 = por %p28_p9, %p27_p8 }
  0x12   :  { %p30_p11 = pnand %p29_p10, %p23_p7 }
  0x14   :  { %33 = shalt.err (!%p30_p11)  }
  0x15   :  { %7 = dma.hbm_to_vmem [thread:$0]  %s2_s8, 8192, %s5_s11, [#allocation0] }
  0x16   :  { %35 = dma.done.wait [#allocation0], 8192  }
  0x17   :  { %36 = vsyncadd [#allocation0], 4294959104 }
  0x18   :  { %9 = vsyncpa [#allocation0], 1 }

// kernel: custom-call
= control target key start
LH: loop header
LB: loop body
LE: loop exit
PB: predicated region body
PF: predicated region fallthrough
CT: control target
= control target key end

     0   :  { %2 = vsyncpa [#allocation0], 0  ;;  %s61_s0 = inlined_call_operand.hbm [shape: c64[2,4,8,8,8], index: 0, kind: input, shape index: {}]   ;;  %s62_s1 = inlined_call_operand.vmem [shape: f32[2,4,8,8,8], index: 1, kind: output, shape index: {}]  }
   0x1   :  { %s3_s8 = sshll.u32 %s62_s1, 4  ;;  %s9_s11 = scalar_lea.hbm %s61_s0, 8192  ;;  %s4_s8 = int_to_ptr.vmem [resolvable:$true] %s3_s8 }
   0x2   :  { %p10_p0 = scmp.ne.s32.totalorder %s61_s0, %s9_s11  ;;  %s11_s16 = scalar_lea.hbm %s61_s0, 16384 }
   0x3   :  { %p12_p1 = scmp.lt.u32.totalorder %s11_s16, %s9_s11  ;;  %p13_p2 = scmp.lt.u32.totalorder %s9_s11, %s61_s0 }
   0x5   :  { %p14_p3 = por %p13_p2, %p12_p1 }
   0x7   :  { %p15_p4 = pnand %p14_p3, %p10_p0 }
   0x9   :  { %18 = shalt.err (!%p15_p4)  }
   0xa   :  { %s19_s1 = scalar_lea.vmem %s4_s8, 8192  ;;  %p24_p6 = scmp.lt.s32.totalorder %s4_s8, %s4_s8 }
   0xb   :  { %p20_p5 = scmp.ne.s32.totalorder %s4_s8, %s19_s1  ;;  %p25_p7 = scmp.lt.s32.totalorder %s19_s1, %s19_s1 }
   0xd   :  { %p26_p8 = por %p25_p7, %p24_p6 }
   0xf   :  { %p27_p9 = pnand %p26_p8, %p20_p5 }
  0x11   :  { %30 = shalt.err (!%p27_p9)  }
  0x12   :  { %6 = dma.hbm_to_vmem [thread:$0]  %s61_s0, 8192, %s4_s8, [#allocation0] }
  0x13   :  { %31 = dma.done.wait [#allocation0], 8192  }
  0x14   :  { %32 = vsyncadd [#allocation0], 4294959104 }
  0x15   :  { %8 = vsyncpa [#allocation0], 1 }

// kernel: custom-call.2
= control target key start
LH: loop header
LB: loop body
LE: loop exit
PB: predicated region body
PF: predicated region fallthrough
CT: control target
= control target key end

     0   :  { %s126_s0 = inlined_call_operand.vmem [shape: f32[2,4,8,8,8], index: 0, kind: input, shape index: {}]   ;;  %s127_s1 = inlined_call_operand.vmem [shape: f32[2,4,8,8,8], index: 1, kind: input, shape index: {}]   ;;  %s128_s2 = inlined_call_operand.hbm [shape: c64[2,4,8,8,8], index: 2, kind: output, shape index: {}]  }
   0x1   :  { %s87_s11 = scalar_lea.hbm %s128_s2, 8192 }
   0x2   :  { %4 = vsyncpa [#allocation0], 0  ;;  %s5_s14 = sshll.u32 %s126_s0, 4  ;;  %s6_s14 = int_to_ptr.vmem [resolvable:$true] %s5_s14 }
   0x3   :  { %s18_s15 = scalar_lea.vmem %s6_s14, 8192  ;;  %p23_p1 = scmp.lt.s32.totalorder %s6_s14, %s6_s14 }
   0x4   :  { %p19_p0 = scmp.ne.s32.totalorder %s6_s14, %s18_s15  ;;  %p24_p2 = scmp.lt.s32.totalorder %s18_s15, %s18_s15 }
   0x6   :  { %p25_p3 = por %p24_p2, %p23_p1 }
   0x8   :  { %p26_p4 = pnand %p25_p3, %p19_p0 }
   0xa   :  { %29 = shalt.err (!%p26_p4)  }
   0xb   :  { %p31_p5 = scmp.ne.s32.totalorder %s128_s2, %s87_s11  ;;  %s32_s0 = scalar_lea.hbm %s128_s2, 16384 }
   0xc   :  { %p33_p6 = scmp.lt.u32.totalorder %s32_s0, %s87_s11  ;;  %p34_p7 = scmp.lt.u32.totalorder %s87_s11, %s128_s2 }
   0xe   :  { %p35_p8 = por %p34_p7, %p33_p6 }
  0x10   :  { %p36_p9 = pnand %p35_p8, %p31_p5 }
  0x12   :  { %39 = shalt.err (!%p36_p9)  }
  0x13   :  { %8 = dma.vmem_to_hbm [thread:$0]  %s6_s14, 8192, %s128_s2, [#allocation0] }
  0x14   :  { %65 = dma.done.wait [#allocation0], 8192  }
  0x15   :  { %66 = vsyncadd [#allocation0], 4294959104 }
  0x16   :  { %10 = vsyncpa [#allocation0], 1 }
  0x17   :  { %11 = vsyncpa [#allocation1], 0  ;;  %s12_s28 = sshll.u32 %s127_s1, 4  ;;  %s13_s28 = int_to_ptr.vmem [resolvable:$true] %s12_s28 }
  0x18   :  { %s40_s29 = scalar_lea.vmem %s13_s28, 8192  ;;  %p45_p11 = scmp.lt.s32.totalorder %s13_s28, %s13_s28 }
  0x19   :  { %p41_p10 = scmp.ne.s32.totalorder %s13_s28, %s40_s29  ;;  %p46_p12 = scmp.lt.s32.totalorder %s40_s29, %s40_s29 }
  0x1b   :  { %p47_p13 = por %p46_p12, %p45_p11 }
  0x1d   :  { %p48_p0 = pnand %p47_p13, %p41_p10 }
  0x1f   :  { %51 = shalt.err (!%p48_p0)  }
  0x20   :  { %p53_p1 = scmp.ne.s32.totalorder %s87_s11, %s32_s0  ;;  %p56_p2 = scmp.lt.u32.totalorder %s32_s0, %s32_s0 }
  0x22   :  { %p57_p3 = por %p56_p2, %p34_p7 }
  0x24   :  { %p59_p4 = por %p57_p3, %p33_p6 }
  0x26   :  { %p60_p5 = pnand %p59_p4, %p53_p1 }
  0x28   :  { %63 = shalt.err (!%p60_p5)  }
  0x29   :  { %15 = dma.vmem_to_hbm [thread:$0]  %s13_s28, 8192, %s87_s11, [#allocation1] }
  0x2a   :  { %67 = dma.done.wait [#allocation1], 8192  }
  0x2b   :  { %68 = vsyncadd [#allocation1], 4294959104 }
  0x2c   :  { %17 = vsyncpa [#allocation1], 1 }

// kernel: complex_gelu.1
= control target key start
LH: loop header
LB: loop body
LE: loop exit
PB: predicated region body
PF: predicated region fallthrough
CT: control target
= control target key end

     0   :  { %s477_s0 = inlined_call_operand.vmem [shape: f32[32,128], index: 0, kind: input, shape index: {}]   ;;  %s478_s1 = inlined_call_operand.vmem [shape: f32[32,128], index: 1, kind: input, shape index: {}]   ;;  %s479_s2 = inlined_call_operand.vmem [shape: f32[32,128], index: 2, kind: output, shape index: {0}]   ;;  %s480_s3 = inlined_call_operand.vmem [shape: f32[32,128], index: 3, kind: output, shape index: {1}]  }
   0x1   :  { %v13_v0 = vld [vmem:[%s477_s0] sm:$0xff]  ;;  %v14_v1 = vld [vmem:[%s477_s0 + $0x8] sm:$0xff]  ;;  %v15_v2 = vld [vmem:[%s477_s0 + $0x10] sm:$0xff] }
   0x2   :  { %v314_v3 = vmul.f32 0.70710677, %v13_v0  ;;  %v316_v4 = vmul.f32 0.70710677, %v14_v1  ;;  %v318_v5 = vmul.f32 0.70710677, %v15_v2 }
   0x3   :  { %v16_v6 = vld [vmem:[%s477_s0 + $0x18] sm:$0xff]  ;;  %v332_v18 = vld [vmem:[%s478_s1] sm:$0xff]  ;;  %v337_v19 = vld [vmem:[%s478_s1 + $0x8] sm:$0xff]  ;;  %v361_v40 = vmul.f32 0.5, %v13_v0  ;;  %v363_v41 = vmul.f32 0.5, %v14_v1  ;;  %v370_v45 = vmul.f32 0.5, %v15_v2 }
   0x4   :  { %v25_v7 = vand.u32 2147483647, %v314_v3  ;;  %v26_v8 = vand.u32 2147483647, %v316_v4  ;;  %v27_v9 = vand.u32 2147483647, %v318_v5 }
   0x5   :  { %v326_v10 = vmul.f32 0.70710677, %v16_v6  ;;  %v342_v21 = vld [vmem:[%s478_s1 + $0x10] sm:$0xff]  ;;  %v345_v23 = vmul.f32 0.70710677, %v332_v18  ;;  %v359_v33 = vld [vmem:[%s478_s1 + $0x18] sm:$0xff] }
   0x6   :  { %v29_v11 = vmul.f32 0.3275911, %v25_v7  ;;  %v30_v12 = vmul.f32 0.3275911, %v26_v8  ;;  %v31_v13 = vmul.f32 0.3275911, %v27_v9 }
   0x7   :  { %v28_v14 = vand.u32 2147483647, %v326_v10  ;;  %v348_v24 = vmul.f32 0.70710677, %v337_v19  ;;  %v81_v25 = vsub.f32 0.0, %v25_v7  ;;  %v82_v29 = vsub.f32 0.0, %v26_v8 }
   0x8   :  { %v33_v15 = vadd.f32 1.0, %v29_v11  ;;  %v34_v16 = vadd.f32 1.0, %v30_v12  ;;  %v35_v20 = vadd.f32 1.0, %v31_v13  ;;  %v351_v26 = vmul.f32 0.70710677, %v342_v21 }
   0x9   :  { %v32_v17 = vmul.f32 0.3275911, %v28_v14  ;;  %v141_v27 = vand.u32 2147483647, %v345_v23  ;;  %v142_v28 = vand.u32 2147483647, %v348_v24  ;;  %v85_v34 = vmul.f32 %v81_v25, %v25_v7 }
   0xa   :  { %253 = vrcp.f32 %v33_v15  ;;  %v143_v30 = vand.u32 2147483647, %v351_v26  ;;  %v83_v35 = vsub.f32 0.0, %v27_v9  ;;  %v84_v37 = vsub.f32 0.0, %v28_v14 }
   0xb   :  { %255 = vrcp.f32 %v34_v16  ;;  %v36_v22 = vadd.f32 1.0, %v32_v17  ;;  %v145_v31 = vmul.f32 0.3275911, %v141_v27  ;;  %v146_v32 = vmul.f32 0.3275911, %v142_v28 }
   0xc   :  { %257 = vrcp.f32 %v35_v20  ;;  %v147_v36 = vmul.f32 0.3275911, %v143_v30  ;;  %v86_v42 = vmul.f32 %v82_v29, %v26_v8  ;;  %v366_v43 = vmul.f32 0.70710677, %v359_v33 }
   0xd   :  { %259 = vrcp.f32 %v36_v22  ;;  %v149_v38 = vadd.f32 1.0, %v145_v31  ;;  %v150_v39 = vadd.f32 1.0, %v146_v32  ;;  %v197_v46 = vsub.f32 0.0, %v141_v27 }
   0xe   :  { %v151_v47 = vadd.f32 1.0, %v147_v36  ;;  %v89_v50 = vmul.f32 1.442695, %v85_v34  ;;  %v87_v51 = vmul.f32 %v83_v35, %v27_v9  ;;  %v88_v53 = vmul.f32 %v84_v37, %v28_v14 }
   0xf   :  { %261 = vrcp.f32 %v149_v38  ;;  %v198_v54 = vsub.f32 0.0, %v142_v28  ;;  %v144_v55 = vand.u32 2147483647, %v366_v43  ;;  %v91_v57 = vmul.f32 1.442695, %v86_v42 }
  0x10   :  { %263 = vrcp.f32 %v150_v39  ;;  %v377_v58 = vmul.f32 0.5, %v16_v6  ;;  %v199_v59 = vsub.f32 0.0, %v143_v30  ;;  %v201_v62 = vmul.f32 %v197_v46, %v141_v27 }
  0x11   :  { %265 = vrcp.f32 %v151_v47  ;;  %v148_v63 = vmul.f32 0.3275911, %v144_v55  ;;  %v93_v2 = vmul.f32 1.442695, %v87_v51  ;;  %v95_v9 = vmul.f32 1.442695, %v88_v53 }
  0x12   :  { %267 = vpow2.f32 %v89_v50  ;;  %v202_v6 = vmul.f32 %v198_v54, %v142_v28  ;;  %v205_v16 = vmul.f32 1.442695, %v201_v62  ;;  %v203_v17 = vmul.f32 %v199_v59, %v143_v30 }
  0x13   :  { %v152_v11 = vadd.f32 1.0, %v148_v63  ;;  %269 = vpow2.f32 %v91_v57  ;;  %v200_v31 = vsub.f32 0.0, %v144_v55  ;;  %vm105_vm0 = vcmp.lt.f32.partialorder %v314_v3, 0.0 }
  0x14   :  { %v368_v44 = vpop.eup %253  ;;  %v207_v29 = vmul.f32 1.442695, %v202_v6  ;;  %v209_v39 = vmul.f32 1.442695, %v203_v17  ;;  %vm106_vm1 = vcmp.lt.f32.partialorder %v316_v4, 0.0  ;;  %vm107_vm2 = vcmp.lt.f32.partialorder %v318_v5, 0.0 }
  0x15   :  { %v372_v48 = vpop.eup %255  ;;  %v45_v49 = vmul.f32 1.0614054, %v368_v44  ;;  %271 = vrcp.f32 %v152_v11  ;;  %v204_v53 = vmul.f32 %v200_v31, %v144_v55  ;;  %vm108_vm3 = vcmp.lt.f32.partialorder %v326_v10, 0.0 }
  0x16   :  { %v46_v52 = vmul.f32 1.0614054, %v372_v48  ;;  %v379_v60 = vpop.eup %257  ;;  %273 = vpow2.f32 %v93_v2  ;;  %vm221_vm4 = vcmp.lt.f32.partialorder %v345_v23, 0.0  ;;  %vm222_vm5 = vcmp.lt.f32.partialorder %v348_v24, 0.0 }
  0x17   :  { %v49_v56 = vadd.f32 -1.4531521, %v45_v49  ;;  %v47_v1 = vmul.f32 1.0614054, %v379_v60  ;;  %v383_v7 = vpop.eup %259  ;;  %275 = vpow2.f32 %v95_v9  ;;  %v133_v23 = vmul.f32 0.5, %v332_v18 }
  0x18   :  { %v50_v61 = vadd.f32 -1.4531521, %v46_v52  ;;  %v48_v14 = vmul.f32 1.0614054, %v383_v7  ;;  %277 = vpow2.f32 %v205_v16  ;;  %vm223_vm6 = vcmp.lt.f32.partialorder %v351_v26, 0.0 }
  0x19   :  { %v53_v0 = vmul.f32 %v368_v44, %v49_v56  ;;  %v51_v13 = vadd.f32 -1.4531521, %v47_v1  ;;  %v389_v27 = vpop.eup %261  ;;  %279 = vpow2.f32 %v207_v29  ;;  %vm224_vm7 = vcmp.lt.f32.partialorder %v366_v43, 0.0 }
  0x1a   :  { %v54_v8 = vmul.f32 %v372_v48, %v50_v61  ;;  %v52_v25 = vadd.f32 -1.4531521, %v48_v14  ;;  %v392_v32 = vpop.eup %263  ;;  %v161_v36 = vmul.f32 1.0614054, %v389_v27  ;;  %281 = vpow2.f32 %v209_v39 }
  0x1b   :  { %v57_v12 = vadd.f32 1.4214138, %v53_v0  ;;  %v55_v22 = vmul.f32 %v379_v60, %v51_v13  ;;  %v162_v38 = vmul.f32 1.0614054, %v392_v32  ;;  %v399_v50 = vpop.eup %265  ;;  %v211_v14 = vmul.f32 1.442695, %v204_v53 }
  0x1c   :  { %v58_v15 = vadd.f32 1.4214138, %v54_v8  ;;  %v56_v30 = vmul.f32 %v383_v7, %v52_v25  ;;  %v165_v49 = vadd.f32 -1.4531521, %v161_v36  ;;  %v268_v54 = vpop.eup %267  ;;  %v163_v0 = vmul.f32 1.0614054, %v399_v50 }
  0x1d   :  { %v61_v20 = vmul.f32 %v368_v44, %v57_v12  ;;  %v59_v35 = vadd.f32 1.4214138, %v55_v22  ;;  %v166_v52 = vadd.f32 -1.4531521, %v162_v38  ;;  %v270_v1 = vpop.eup %269  ;;  %283 = vpow2.f32 %v211_v14 }
  0x1e   :  { %v62_v28 = vmul.f32 %v372_v48, %v58_v15  ;;  %v60_v47 = vadd.f32 1.4214138, %v56_v30  ;;  %v169_v61 = vmul.f32 %v389_v27, %v165_v49  ;;  %v167_v13 = vadd.f32 -1.4531521, %v163_v0 }
  0x1f   :  { %v65_v34 = vadd.f32 -0.28449672, %v61_v20  ;;  %v63_v46 = vmul.f32 %v379_v60, %v59_v35  ;;  %v170_v63 = vmul.f32 %v392_v32, %v166_v52  ;;  %v410_v6 = vpop.eup %271 }
  0x20   :  { %v66_v37 = vadd.f32 -0.28449672, %v62_v28  ;;  %v64_v59 = vmul.f32 %v383_v7, %v60_v47  ;;  %v173_v9 = vadd.f32 1.4214138, %v169_v61  ;;  %v274_v15 = vpop.eup %273  ;;  %v164_v29 = vmul.f32 1.0614054, %v410_v6 }
  0x21   :  { %v69_v42 = vmul.f32 %v368_v44, %v65_v34  ;;  %v67_v57 = vadd.f32 -0.28449672, %v63_v46  ;;  %v174_v12 = vadd.f32 1.4214138, %v170_v63  ;;  %v276_v22 = vpop.eup %275 }
  0x22   :  { %v70_v51 = vmul.f32 %v372_v48, %v66_v37  ;;  %v68_v8 = vadd.f32 -0.28449672, %v64_v59  ;;  %v278_v36 = vpop.eup %277 }
  0x23   :  { %v73_v56 = vadd.f32 0.2548296, %v69_v42  ;;  %v71_v55 = vmul.f32 %v379_v60, %v67_v57  ;;  %v178_v28 = vmul.f32 %v392_v32, %v174_v12 }
  0x24   :  { %v74_v62 = vadd.f32 0.2548296, %v70_v51  ;;  %v72_v20 = vmul.f32 %v383_v7, %v68_v8  ;;  %v280_v51 = vpop.eup %279 }
  0x25   :  { %v77_v2 = vmul.f32 %v368_v44, %v73_v56  ;;  %v75_v17 = vadd.f32 0.2548296, %v71_v55  ;;  %v177_v44 = vmul.f32 %v389_v27, %v173_v9  ;;  %v182_v38 = vadd.f32 -0.28449672, %v178_v28 }
  0x26   :  { %v78_v11 = vmul.f32 %v372_v48, %v74_v62  ;;  %v171_v48 = vmul.f32 %v399_v50, %v167_v13  ;;  %v76_v35 = vadd.f32 0.2548296, %v72_v20  ;;  %v282_v62 = vpop.eup %281 }
  0x27   :  { %v97_v16 = vmul.f32 %v268_v54, %v77_v2  ;;  %v79_v34 = vmul.f32 %v379_v60, %v75_v17  ;;  %v181_v30 = vadd.f32 -0.28449672, %v177_v44  ;;  %v186_v53 = vmul.f32 %v392_v32, %v182_v38  ;;  %v284_v5 = vpop.eup %283 }
  0x28   :  { %v98_v25 = vmul.f32 %v270_v1, %v78_v11  ;;  %v175_v39 = vadd.f32 1.4214138, %v171_v48  ;;  %v80_v47 = vmul.f32 %v383_v7, %v76_v35  ;;  %v168_v60 = vadd.f32 -1.4531521, %v164_v29 }
  0x29   :  { %v101_v31 = vsub.f32 1.0, %v97_v16  ;;  %v99_v46 = vmul.f32 %v274_v15, %v79_v34  ;;  %v185_v49 = vmul.f32 %v389_v27, %v181_v30  ;;  %v190_v0 = vadd.f32 0.2548296, %v186_v53 }
  0x2a   :  { %v102_v37 = vsub.f32 1.0, %v98_v25  ;;  %v179_v54 = vmul.f32 %v399_v50, %v175_v39  ;;  %v100_v59 = vmul.f32 %v276_v22, %v80_v47  ;;  %v172_v13 = vmul.f32 %v410_v6, %v168_v60 }
  0x2b   :  { %v109_v42 = vsub.f32 0.0, %v101_v31  ;;  %v103_v57 = vsub.f32 1.0, %v99_v46  ;;  %v189_v61 = vadd.f32 0.2548296, %v185_v49  ;;  %v194_v3 = vmul.f32 %v392_v32, %v190_v0 }
  0x2c   :  { %v110_v52 = vsub.f32 0.0, %v102_v37  ;;  %v183_v1 = vadd.f32 -0.28449672, %v179_v54  ;;  %v104_v8 = vsub.f32 1.0, %v100_v59  ;;  %v176_v20 = vadd.f32 1.4214138, %v172_v13 }
  0x2d   :  { %v113_v56 = vsel %vm105_vm0, %v109_v42, %v101_v31  ;;  %v111_v55 = vsub.f32 0.0, %v103_v57  ;;  %v193_v9 = vmul.f32 %v389_v27, %v189_v61  ;;  %v214_v17 = vmul.f32 %v280_v51, %v194_v3 }
  0x2e   :  { %v117_v63 = vadd.f32 1.0, %v113_v56  ;;  %v114_v7 = vsel %vm106_vm1, %v110_v52, %v102_v37  ;;  %v187_v12 = vmul.f32 %v399_v50, %v183_v1  ;;  %v112_v15 = vsub.f32 0.0, %v104_v8 }
  0x2f   :  { %v118_v2 = vadd.f32 1.0, %v114_v7  ;;  %v115_v4 = vsel %vm107_vm2, %v111_v55, %v103_v57  ;;  %v213_v16 = vmul.f32 %v278_v36, %v193_v9  ;;  %v218_v25 = vsub.f32 1.0, %v214_v17 }
  0x30   :  { %v121_v11 = vmul.f32 %v117_v63, %v361_v40  ;;  %v119_v27 = vadd.f32 1.0, %v115_v4  ;;  %v191_v40 = vadd.f32 0.2548296, %v187_v12  ;;  %v180_v29 = vmul.f32 %v410_v6, %v176_v20 }
  0x31   :  { %v122_v14 = vmul.f32 %v118_v2, %v363_v41  ;;  %v116_v41 = vsel %vm108_vm3, %v112_v15, %v104_v8  ;;  %v217_v32 = vsub.f32 1.0, %v213_v16  ;;  %v226_v31 = vsub.f32 0.0, %v218_v25 }
  0x32   :  { %125 = vst [vmem:[%s479_s2] sm:$0xff] %v121_v11  ;;  %v123_v44 = vmul.f32 %v119_v27, %v370_v45  ;;  %v120_v22 = vadd.f32 1.0, %v116_v41  ;;  %v195_v28 = vmul.f32 %v399_v50, %v191_v40  ;;  %v134_v35 = vmul.f32 0.5, %v337_v19 }
  0x33   :  { %126 = vst [vmem:[%s479_s2 + $0x8] sm:$0xff] %v122_v14  ;;  %v225_v48 = vsub.f32 0.0, %v217_v32  ;;  %v184_v30 = vadd.f32 -0.28449672, %v180_v29  ;;  %v230_v50 = vsel %vm222_vm5, %v226_v31, %v218_v25  ;;  %v135_v42 = vmul.f32 0.5, %v342_v21 }
  0x34   :  { %127 = vst [vmem:[%s479_s2 + $0x10] sm:$0xff] %v123_v44  ;;  %v124_v10 = vmul.f32 %v120_v22, %v377_v58  ;;  %v215_v34 = vmul.f32 %v282_v62, %v195_v28  ;;  %v234_v37 = vadd.f32 1.0, %v230_v50  ;;  %v136_v53 = vmul.f32 0.5, %v359_v33 }
  0x35   :  { %v229_v45 = vsel %vm221_vm4, %v225_v48, %v217_v32  ;;  %v188_v58 = vmul.f32 %v410_v6, %v184_v30 }
  0x36   :  { %128 = vst [vmem:[%s479_s2 + $0x18] sm:$0xff] %v124_v10  ;;  %v233_v24 = vadd.f32 1.0, %v229_v45  ;;  %v219_v36 = vsub.f32 1.0, %v215_v34  ;;  %v238_v39 = vmul.f32 %v234_v37, %v134_v35 }
  0x37   :  { %v192_v46 = vadd.f32 0.2548296, %v188_v58 }
  0x38   :  { %v237_v38 = vmul.f32 %v233_v24, %v133_v23  ;;  %v227_v18 = vsub.f32 0.0, %v219_v36  ;;  %242 = vst [vmem:[%s480_s3 + $0x8] sm:$0xff] %v238_v39 }
  0x39   :  { %v196_v26 = vmul.f32 %v410_v6, %v192_v46 }
  0x3a   :  { %241 = vst [vmem:[%s480_s3] sm:$0xff] %v237_v38  ;;  %v231_v19 = vsel %vm223_vm6, %v227_v18, %v219_v36 }
  0x3b   :  { %v235_v47 = vadd.f32 1.0, %v231_v19  ;;  %v216_v51 = vmul.f32 %v284_v5, %v196_v26 }
  0x3d   :  { %v239_v49 = vmul.f32 %v235_v47, %v135_v42  ;;  %v220_v21 = vsub.f32 1.0, %v216_v51 }
  0x3f   :  { %243 = vst [vmem:[%s480_s3 + $0x10] sm:$0xff] %v239_v49  ;;  %v228_v52 = vsub.f32 0.0, %v220_v21 }
  0x41   :  { %v232_v54 = vsel %vm224_vm7, %v228_v52, %v220_v21 }
  0x42   :  { %v236_v60 = vadd.f32 1.0, %v232_v54 }
  0x44   :  { %v240_v56 = vmul.f32 %v236_v60, %v136_v53 }
  0x46   :  { %244 = vst [vmem:[%s480_s3 + $0x18] sm:$0xff] %v240_v56 }

</bundles_post_ra>
